<compile_context>
chip_gen: v5e
topology: v5e:2x2
jax: 0.10.0
libtpu: 0.0.40
codegen_flags: <defaults>
</compile_context>

<pallas_src>
import jax
import jax.numpy as jnp
from jax.experimental import pallas as pl
from jax.experimental.pallas import tpu as pltpu

IN = 3
HIDDEN = 9
OUT = 4

# Packed SMEM parameter slab layout (1-D f32):
_W1_OFF = 0                       # 27: W1 row-major, index h*IN + i
_B1_OFF = _W1_OFF + HIDDEN * IN   # 9 : b1 - c  (constant folded in)
_W2_OFF = _B1_OFF + HIDDEN        # 36: W2 row-major, index o*HIDDEN + h
_B2_OFF = _W2_OFF + OUT * HIDDEN  # 4 : b2
P_LEN = 128                       # padded slab length (76 used)


def _cdiv(a, b):
    return -(-a // b)


def _round_up(a, b):
    return _cdiv(a, b) * b


def _mlp_kernel(p_ref, x_ref, o_ref):
    """p_ref: (P_LEN,) f32 in SMEM.  x_ref: (IN, br, L).  o_ref: (OUT, br, L)."""
    xs = [x_ref[i] for i in range(IN)]            # IN dense (br, L) planes
    outs = [None] * OUT

    # Streaming schedule: compute one hidden plane at a time, accumulate into
    # the OUT output planes (minimal live VMEM: IN + OUT + 1 planes).
    for h_idx in range(HIDDEN):
        acc = p_ref[_B1_OFF + h_idx] + p_ref[_W1_OFF + h_idx * IN] * xs[0]
        for i_idx in range(1, IN):
            acc = acc + p_ref[_W1_OFF + h_idx * IN + i_idx] * xs[i_idx]
        h = jnp.maximum(acc, 0.0)
        for o_idx in range(OUT):
            term = p_ref[_W2_OFF + o_idx * HIDDEN + h_idx] * h
            if outs[o_idx] is None:
                outs[o_idx] = p_ref[_B2_OFF + o_idx] + term
            else:
                outs[o_idx] = outs[o_idx] + term

    for o_idx in range(OUT):
        o_ref[o_idx] = outs[o_idx]                # dense, unmasked full-lane stores


def _forward_from_packed(x, p):
    """Plain-XLA path (tiny batches) using the same packed/repaired params."""
    w1 = p[_W1_OFF:_W1_OFF + HIDDEN * IN].reshape(HIDDEN, IN)
    b1f = p[_B1_OFF:_B1_OFF + HIDDEN]
    w2 = p[_W2_OFF:_W2_OFF + OUT * HIDDEN].reshape(OUT, HIDDEN)
    b2 = p[_B2_OFF:_B2_OFF + OUT]
    h = jnp.maximum(x @ w1.T + b1f, 0.0)
    return h @ w2.T + b2


def fused_mlp(x, packed, *, block_rows=128, lanes=1024, min_kernel_batch=1024):
    """x: (B, 3) f32; packed: (P_LEN,) f32 SMEM slab. Returns (B, 4) f32."""
    assert lanes % 128 == 0, "lane width must be a multiple of 128"
    B = x.shape[0]
    x = x.astype(jnp.float32)

    if B < min_kernel_batch:
        # ~126 FLOPs/row: launch + grid-step overhead dominates -> plain XLA.
        return _forward_from_packed(x, packed)

    n_rows = _cdiv(B, lanes)
    # Shrink the row-block so the grid has >=2 steps when possible (keeps both
    # v7x TensorCores busy); keep it a multiple of 8 (sublane constraint).
    br = max(8, min(block_rows, _round_up(_cdiv(n_rows, 2), 8)))
    rows_p = _round_up(max(n_rows, br), br)
    Bp = rows_p * lanes

    xp = x if Bp == B else jnp.pad(x, ((0, Bp - B), (0, 0)))
    # Single relayout pass: (B,3) -> (3, rows_p, lanes); the pad fuses into it.
    x3 = jnp.transpose(xp).reshape(IN, rows_p, lanes)

    out3 = pl.pallas_call(
        _mlp_kernel,
        out_shape=jax.ShapeDtypeStruct((OUT, rows_p, lanes), jnp.float32),
        grid=(rows_p // br,),
        in_specs=[
            pl.BlockSpec(memory_space=pltpu.MemorySpace.SMEM),   # 76 scalars
            pl.BlockSpec((IN, br, lanes), lambda i: (0, i, 0)),
        ],
        out_specs=pl.BlockSpec((OUT, br, lanes), lambda i: (0, i, 0)),
        compiler_params=pltpu.CompilerParams(
            dimension_semantics=("parallel",),
            vmem_limit_bytes=32 * 1024 * 1024,
        ),
    )(packed, x3)

    out = jnp.transpose(out3.reshape(OUT, Bp))
    return out[:B] if Bp != B else out


def make_params(key):
    """Deterministic Linear params, mimicking torch's U(-1/sqrt(fan_in), +) init."""
    k1, k2, k3, k4 = jax.random.split(key, 4)
    bound1 = 1.0 / jnp.sqrt(3.0)
    w1 = jax.random.uniform(k1, (HIDDEN, IN), jnp.float32, -bound1, bound1)
    b1 = jax.random.uniform(k2, (HIDDEN,), jnp.float32, -bound1, bound1)
    bound2 = 1.0 / jnp.sqrt(9.0)
    w2 = jax.random.uniform(k3, (OUT, HIDDEN), jnp.float32, -bound2, bound2)
    b2 = jax.random.uniform(k4, (OUT,), jnp.float32, -bound2, bound2)
    return w1, b1, w2, b2


def _padded_constant():
    # Length-4 constant from the forward pass, zero-padded to 9 features.
    c4 = jnp.array([1.2, 2.3, 3.4, 4.5], dtype=jnp.float32)
    return jnp.zeros((HIDDEN,), jnp.float32).at[:OUT].set(c4)


def pack_params(w1, b1, w2, b2):
    """Pack all params (constant folded into b1) into one 1-D f32 SMEM slab."""
    b1_fused = b1 - _padded_constant()
    flat = jnp.concatenate(
        [w1.reshape(-1), b1_fused, w2.reshape(-1), b2]).astype(jnp.float32)
    return jnp.pad(flat, (0, P_LEN - flat.shape[0]))


def reference_forward(x, w1, b1, w2, b2):
    """Pure-JAX reference of the same (repaired) semantics."""
    v1 = x @ w1.T + b1
    v2 = v1 - _padded_constant()
    h = jnp.maximum(v2, 0.0)
    return h @ w2.T + b2


if __name__ == "__main__":
    root = jax.random.PRNGKey(0)
    pkey, xkey1, xkey2 = jax.random.split(root, 3)

    # Parameters built & packed once, hoisted out of the jitted forward.
    w1, b1, w2, b2 = make_params(pkey)
    params = pack_params(w1, b1, w2, b2)

    fwd = jax.jit(fused_mlp,
                  static_argnames=("block_rows", "lanes", "min_kernel_batch"))

    # 1) Module spec shape (1, 3), forced through the Pallas kernel.
    x1 = jax.random.normal(xkey1, (1, IN), dtype=jnp.float32)
    out1 = jax.block_until_ready(
        fwd(x1, params, block_rows=8, lanes=256, min_kernel_batch=0))
    ref1 = reference_forward(x1, w1, b1, w2, b2)
    assert out1.shape == (1, OUT), out1.shape
    assert jnp.allclose(out1, ref1, atol=1e-5, rtol=1e-5), (out1, ref1)

    # 2) Ragged batch exercising a multi-step ("parallel") grid + row padding.
    xb = jax.random.normal(xkey2, (4100, IN), dtype=jnp.float32)
    outb = jax.block_until_ready(
        fwd(xb, params, block_rows=8, lanes=256, min_kernel_batch=0))
    refb = reference_forward(xb, w1, b1, w2, b2)
    assert outb.shape == (4100, OUT), outb.shape
    assert jnp.allclose(outb, refb, atol=1e-5, rtol=1e-5)

    # 3) Default dispatch: tiny batch takes the plain-XLA fallback path.
    outs = jax.block_until_ready(fwd(x1, params))
    assert jnp.allclose(outs, ref1, atol=1e-5, rtol=1e-5)

    print("KERNEL_OK")
</pallas_src>

<mosaic_0001>
module attributes {stable_mosaic.version = 11 : i64} {
  func.func @_mlp_kernel(%arg0: i32, %arg1: memref<128xf32, #tpu.memory_space<smem>>, %arg2: memref<3x8x256xf32, #tpu.memory_space<vmem>>, %arg3: memref<4x8x256xf32, #tpu.memory_space<vmem>>) attributes {dimension_semantics = [#tpu.dimension_semantics<parallel>], iteration_bounds = array<i64: 1>, scalar_prefetch = 0 : i64, scratch_operands = 0 : i64, tpu.core_type = #tpu.core_type<tc>, window_params = [{transform_indices = @transform_0, window_bounds = array<i64: 128>}, {transform_indices = @transform_1, window_bounds = array<i64: 3, 8, 256>}, {transform_indices = @transform_2, window_bounds = array<i64: 4, 8, 256>}]} {
    %c0 = arith.constant 0 : index
    %c0_0 = arith.constant 0 : index
    %c0_1 = arith.constant 0 : index
    %0 = vector.load %arg2[%c0, %c0_0, %c0_1] : memref<3x8x256xf32, #tpu.memory_space<vmem>>, vector<1x8x256xf32>
    %1 = vector.shape_cast %0 : vector<1x8x256xf32> to vector<8x256xf32>
    %c1 = arith.constant 1 : index
    %c0_2 = arith.constant 0 : index
    %c0_3 = arith.constant 0 : index
    %2 = vector.load %arg2[%c1, %c0_2, %c0_3] : memref<3x8x256xf32, #tpu.memory_space<vmem>>, vector<1x8x256xf32>
    %3 = vector.shape_cast %2 : vector<1x8x256xf32> to vector<8x256xf32>
    %c2 = arith.constant 2 : index
    %c0_4 = arith.constant 0 : index
    %c0_5 = arith.constant 0 : index
    %4 = vector.load %arg2[%c2, %c0_4, %c0_5] : memref<3x8x256xf32, #tpu.memory_space<vmem>>, vector<1x8x256xf32>
    %5 = vector.shape_cast %4 : vector<1x8x256xf32> to vector<8x256xf32>
    %c27 = arith.constant 27 : index
    %6 = memref.load %arg1[%c27] : memref<128xf32, #tpu.memory_space<smem>>
    %c0_6 = arith.constant 0 : index
    %7 = memref.load %arg1[%c0_6] : memref<128xf32, #tpu.memory_space<smem>>
    %8 = vector.broadcast %7 : f32 to vector<8x256xf32>
    %9 = arith.mulf %8, %1 : vector<8x256xf32>
    %10 = vector.broadcast %6 : f32 to vector<8x256xf32>
    %11 = arith.addf %10, %9 : vector<8x256xf32>
    %c1_7 = arith.constant 1 : index
    %12 = memref.load %arg1[%c1_7] : memref<128xf32, #tpu.memory_space<smem>>
    %13 = vector.broadcast %12 : f32 to vector<8x256xf32>
    %14 = arith.mulf %13, %3 : vector<8x256xf32>
    %15 = arith.addf %11, %14 : vector<8x256xf32>
    %c2_8 = arith.constant 2 : index
    %16 = memref.load %arg1[%c2_8] : memref<128xf32, #tpu.memory_space<smem>>
    %17 = vector.broadcast %16 : f32 to vector<8x256xf32>
    %18 = arith.mulf %17, %5 : vector<8x256xf32>
    %19 = arith.addf %15, %18 : vector<8x256xf32>
    %cst = arith.constant 0.000000e+00 : f32
    %20 = vector.broadcast %cst : f32 to vector<8x256xf32>
    %21 = arith.maximumf %19, %20 : vector<8x256xf32>
    %c36 = arith.constant 36 : index
    %22 = memref.load %arg1[%c36] : memref<128xf32, #tpu.memory_space<smem>>
    %23 = vector.broadcast %22 : f32 to vector<8x256xf32>
    %24 = arith.mulf %23, %21 : vector<8x256xf32>
    %c72 = arith.constant 72 : index
    %25 = memref.load %arg1[%c72] : memref<128xf32, #tpu.memory_space<smem>>
    %26 = vector.broadcast %25 : f32 to vector<8x256xf32>
    %27 = arith.addf %26, %24 : vector<8x256xf32>
    %c45 = arith.constant 45 : index
    %28 = memref.load %arg1[%c45] : memref<128xf32, #tpu.memory_space<smem>>
    %29 = vector.broadcast %28 : f32 to vector<8x256xf32>
    %30 = arith.mulf %29, %21 : vector<8x256xf32>
    %c73 = arith.constant 73 : index
    %31 = memref.load %arg1[%c73] : memref<128xf32, #tpu.memory_space<smem>>
    %32 = vector.broadcast %31 : f32 to vector<8x256xf32>
    %33 = arith.addf %32, %30 : vector<8x256xf32>
    %c54 = arith.constant 54 : index
    %34 = memref.load %arg1[%c54] : memref<128xf32, #tpu.memory_space<smem>>
    %35 = vector.broadcast %34 : f32 to vector<8x256xf32>
    %36 = arith.mulf %35, %21 : vector<8x256xf32>
    %c74 = arith.constant 74 : index
    %37 = memref.load %arg1[%c74] : memref<128xf32, #tpu.memory_space<smem>>
    %38 = vector.broadcast %37 : f32 to vector<8x256xf32>
    %39 = arith.addf %38, %36 : vector<8x256xf32>
    %c63 = arith.constant 63 : index
    %40 = memref.load %arg1[%c63] : memref<128xf32, #tpu.memory_space<smem>>
    %41 = vector.broadcast %40 : f32 to vector<8x256xf32>
    %42 = arith.mulf %41, %21 : vector<8x256xf32>
    %c75 = arith.constant 75 : index
    %43 = memref.load %arg1[%c75] : memref<128xf32, #tpu.memory_space<smem>>
    %44 = vector.broadcast %43 : f32 to vector<8x256xf32>
    %45 = arith.addf %44, %42 : vector<8x256xf32>
    %c28 = arith.constant 28 : index
    %46 = memref.load %arg1[%c28] : memref<128xf32, #tpu.memory_space<smem>>
    %c3 = arith.constant 3 : index
    %47 = memref.load %arg1[%c3] : memref<128xf32, #tpu.memory_space<smem>>
    %48 = vector.broadcast %47 : f32 to vector<8x256xf32>
    %49 = arith.mulf %48, %1 : vector<8x256xf32>
    %50 = vector.broadcast %46 : f32 to vector<8x256xf32>
    %51 = arith.addf %50, %49 : vector<8x256xf32>
    %c4 = arith.constant 4 : index
    %52 = memref.load %arg1[%c4] : memref<128xf32, #tpu.memory_space<smem>>
    %53 = vector.broadcast %52 : f32 to vector<8x256xf32>
    %54 = arith.mulf %53, %3 : vector<8x256xf32>
    %55 = arith.addf %51, %54 : vector<8x256xf32>
    %c5 = arith.constant 5 : index
    %56 = memref.load %arg1[%c5] : memref<128xf32, #tpu.memory_space<smem>>
    %57 = vector.broadcast %56 : f32 to vector<8x256xf32>
    %58 = arith.mulf %57, %5 : vector<8x256xf32>
    %59 = arith.addf %55, %58 : vector<8x256xf32>
    %cst_9 = arith.constant 0.000000e+00 : f32
    %60 = vector.broadcast %cst_9 : f32 to vector<8x256xf32>
    %61 = arith.maximumf %59, %60 : vector<8x256xf32>
    %c37 = arith.constant 37 : index
    %62 = memref.load %arg1[%c37] : memref<128xf32, #tpu.memory_space<smem>>
    %63 = vector.broadcast %62 : f32 to vector<8x256xf32>
    %64 = arith.mulf %63, %61 : vector<8x256xf32>
    %65 = arith.addf %27, %64 : vector<8x256xf32>
    %c46 = arith.constant 46 : index
    %66 = memref.load %arg1[%c46] : memref<128xf32, #tpu.memory_space<smem>>
    %67 = vector.broadcast %66 : f32 to vector<8x256xf32>
    %68 = arith.mulf %67, %61 : vector<8x256xf32>
    %69 = arith.addf %33, %68 : vector<8x256xf32>
    %c55 = arith.constant 55 : index
    %70 = memref.load %arg1[%c55] : memref<128xf32, #tpu.memory_space<smem>>
    %71 = vector.broadcast %70 : f32 to vector<8x256xf32>
    %72 = arith.mulf %71, %61 : vector<8x256xf32>
    %73 = arith.addf %39, %72 : vector<8x256xf32>
    %c64 = arith.constant 64 : index
    %74 = memref.load %arg1[%c64] : memref<128xf32, #tpu.memory_space<smem>>
    %75 = vector.broadcast %74 : f32 to vector<8x256xf32>
    %76 = arith.mulf %75, %61 : vector<8x256xf32>
    %77 = arith.addf %45, %76 : vector<8x256xf32>
    %c29 = arith.constant 29 : index
    %78 = memref.load %arg1[%c29] : memref<128xf32, #tpu.memory_space<smem>>
    %c6 = arith.constant 6 : index
    %79 = memref.load %arg1[%c6] : memref<128xf32, #tpu.memory_space<smem>>
    %80 = vector.broadcast %79 : f32 to vector<8x256xf32>
    %81 = arith.mulf %80, %1 : vector<8x256xf32>
    %82 = vector.broadcast %78 : f32 to vector<8x256xf32>
    %83 = arith.addf %82, %81 : vector<8x256xf32>
    %c7 = arith.constant 7 : index
    %84 = memref.load %arg1[%c7] : memref<128xf32, #tpu.memory_space<smem>>
    %85 = vector.broadcast %84 : f32 to vector<8x256xf32>
    %86 = arith.mulf %85, %3 : vector<8x256xf32>
    %87 = arith.addf %83, %86 : vector<8x256xf32>
    %c8 = arith.constant 8 : index
    %88 = memref.load %arg1[%c8] : memref<128xf32, #tpu.memory_space<smem>>
    %89 = vector.broadcast %88 : f32 to vector<8x256xf32>
    %90 = arith.mulf %89, %5 : vector<8x256xf32>
    %91 = arith.addf %87, %90 : vector<8x256xf32>
    %cst_10 = arith.constant 0.000000e+00 : f32
    %92 = vector.broadcast %cst_10 : f32 to vector<8x256xf32>
    %93 = arith.maximumf %91, %92 : vector<8x256xf32>
    %c38 = arith.constant 38 : index
    %94 = memref.load %arg1[%c38] : memref<128xf32, #tpu.memory_space<smem>>
    %95 = vector.broadcast %94 : f32 to vector<8x256xf32>
    %96 = arith.mulf %95, %93 : vector<8x256xf32>
    %97 = arith.addf %65, %96 : vector<8x256xf32>
    %c47 = arith.constant 47 : index
    %98 = memref.load %arg1[%c47] : memref<128xf32, #tpu.memory_space<smem>>
    %99 = vector.broadcast %98 : f32 to vector<8x256xf32>
    %100 = arith.mulf %99, %93 : vector<8x256xf32>
    %101 = arith.addf %69, %100 : vector<8x256xf32>
    %c56 = arith.constant 56 : index
    %102 = memref.load %arg1[%c56] : memref<128xf32, #tpu.memory_space<smem>>
    %103 = vector.broadcast %102 : f32 to vector<8x256xf32>
    %104 = arith.mulf %103, %93 : vector<8x256xf32>
    %105 = arith.addf %73, %104 : vector<8x256xf32>
    %c65 = arith.constant 65 : index
    %106 = memref.load %arg1[%c65] : memref<128xf32, #tpu.memory_space<smem>>
    %107 = vector.broadcast %106 : f32 to vector<8x256xf32>
    %108 = arith.mulf %107, %93 : vector<8x256xf32>
    %109 = arith.addf %77, %108 : vector<8x256xf32>
    %c30 = arith.constant 30 : index
    %110 = memref.load %arg1[%c30] : memref<128xf32, #tpu.memory_space<smem>>
    %c9 = arith.constant 9 : index
    %111 = memref.load %arg1[%c9] : memref<128xf32, #tpu.memory_space<smem>>
    %112 = vector.broadcast %111 : f32 to vector<8x256xf32>
    %113 = arith.mulf %112, %1 : vector<8x256xf32>
    %114 = vector.broadcast %110 : f32 to vector<8x256xf32>
    %115 = arith.addf %114, %113 : vector<8x256xf32>
    %c10 = arith.constant 10 : index
    %116 = memref.load %arg1[%c10] : memref<128xf32, #tpu.memory_space<smem>>
    %117 = vector.broadcast %116 : f32 to vector<8x256xf32>
    %118 = arith.mulf %117, %3 : vector<8x256xf32>
    %119 = arith.addf %115, %118 : vector<8x256xf32>
    %c11 = arith.constant 11 : index
    %120 = memref.load %arg1[%c11] : memref<128xf32, #tpu.memory_space<smem>>
    %121 = vector.broadcast %120 : f32 to vector<8x256xf32>
    %122 = arith.mulf %121, %5 : vector<8x256xf32>
    %123 = arith.addf %119, %122 : vector<8x256xf32>
    %cst_11 = arith.constant 0.000000e+00 : f32
    %124 = vector.broadcast %cst_11 : f32 to vector<8x256xf32>
    %125 = arith.maximumf %123, %124 : vector<8x256xf32>
    %c39 = arith.constant 39 : index
    %126 = memref.load %arg1[%c39] : memref<128xf32, #tpu.memory_space<smem>>
    %127 = vector.broadcast %126 : f32 to vector<8x256xf32>
    %128 = arith.mulf %127, %125 : vector<8x256xf32>
    %129 = arith.addf %97, %128 : vector<8x256xf32>
    %c48 = arith.constant 48 : index
    %130 = memref.load %arg1[%c48] : memref<128xf32, #tpu.memory_space<smem>>
    %131 = vector.broadcast %130 : f32 to vector<8x256xf32>
    %132 = arith.mulf %131, %125 : vector<8x256xf32>
    %133 = arith.addf %101, %132 : vector<8x256xf32>
    %c57 = arith.constant 57 : index
    %134 = memref.load %arg1[%c57] : memref<128xf32, #tpu.memory_space<smem>>
    %135 = vector.broadcast %134 : f32 to vector<8x256xf32>
    %136 = arith.mulf %135, %125 : vector<8x256xf32>
    %137 = arith.addf %105, %136 : vector<8x256xf32>
    %c66 = arith.constant 66 : index
    %138 = memref.load %arg1[%c66] : memref<128xf32, #tpu.memory_space<smem>>
    %139 = vector.broadcast %138 : f32 to vector<8x256xf32>
    %140 = arith.mulf %139, %125 : vector<8x256xf32>
    %141 = arith.addf %109, %140 : vector<8x256xf32>
    %c31 = arith.constant 31 : index
    %142 = memref.load %arg1[%c31] : memref<128xf32, #tpu.memory_space<smem>>
    %c12 = arith.constant 12 : index
    %143 = memref.load %arg1[%c12] : memref<128xf32, #tpu.memory_space<smem>>
    %144 = vector.broadcast %143 : f32 to vector<8x256xf32>
    %145 = arith.mulf %144, %1 : vector<8x256xf32>
    %146 = vector.broadcast %142 : f32 to vector<8x256xf32>
    %147 = arith.addf %146, %145 : vector<8x256xf32>
    %c13 = arith.constant 13 : index
    %148 = memref.load %arg1[%c13] : memref<128xf32, #tpu.memory_space<smem>>
    %149 = vector.broadcast %148 : f32 to vector<8x256xf32>
    %150 = arith.mulf %149, %3 : vector<8x256xf32>
    %151 = arith.addf %147, %150 : vector<8x256xf32>
    %c14 = arith.constant 14 : index
    %152 = memref.load %arg1[%c14] : memref<128xf32, #tpu.memory_space<smem>>
    %153 = vector.broadcast %152 : f32 to vector<8x256xf32>
    %154 = arith.mulf %153, %5 : vector<8x256xf32>
    %155 = arith.addf %151, %154 : vector<8x256xf32>
    %cst_12 = arith.constant 0.000000e+00 : f32
    %156 = vector.broadcast %cst_12 : f32 to vector<8x256xf32>
    %157 = arith.maximumf %155, %156 : vector<8x256xf32>
    %c40 = arith.constant 40 : index
    %158 = memref.load %arg1[%c40] : memref<128xf32, #tpu.memory_space<smem>>
    %159 = vector.broadcast %158 : f32 to vector<8x256xf32>
    %160 = arith.mulf %159, %157 : vector<8x256xf32>
    %161 = arith.addf %129, %160 : vector<8x256xf32>
    %c49 = arith.constant 49 : index
    %162 = memref.load %arg1[%c49] : memref<128xf32, #tpu.memory_space<smem>>
    %163 = vector.broadcast %162 : f32 to vector<8x256xf32>
    %164 = arith.mulf %163, %157 : vector<8x256xf32>
    %165 = arith.addf %133, %164 : vector<8x256xf32>
    %c58 = arith.constant 58 : index
    %166 = memref.load %arg1[%c58] : memref<128xf32, #tpu.memory_space<smem>>
    %167 = vector.broadcast %166 : f32 to vector<8x256xf32>
    %168 = arith.mulf %167, %157 : vector<8x256xf32>
    %169 = arith.addf %137, %168 : vector<8x256xf32>
    %c67 = arith.constant 67 : index
    %170 = memref.load %arg1[%c67] : memref<128xf32, #tpu.memory_space<smem>>
    %171 = vector.broadcast %170 : f32 to vector<8x256xf32>
    %172 = arith.mulf %171, %157 : vector<8x256xf32>
    %173 = arith.addf %141, %172 : vector<8x256xf32>
    %c32 = arith.constant 32 : index
    %174 = memref.load %arg1[%c32] : memref<128xf32, #tpu.memory_space<smem>>
    %c15 = arith.constant 15 : index
    %175 = memref.load %arg1[%c15] : memref<128xf32, #tpu.memory_space<smem>>
    %176 = vector.broadcast %175 : f32 to vector<8x256xf32>
    %177 = arith.mulf %176, %1 : vector<8x256xf32>
    %178 = vector.broadcast %174 : f32 to vector<8x256xf32>
    %179 = arith.addf %178, %177 : vector<8x256xf32>
    %c16 = arith.constant 16 : index
    %180 = memref.load %arg1[%c16] : memref<128xf32, #tpu.memory_space<smem>>
    %181 = vector.broadcast %180 : f32 to vector<8x256xf32>
    %182 = arith.mulf %181, %3 : vector<8x256xf32>
    %183 = arith.addf %179, %182 : vector<8x256xf32>
    %c17 = arith.constant 17 : index
    %184 = memref.load %arg1[%c17] : memref<128xf32, #tpu.memory_space<smem>>
    %185 = vector.broadcast %184 : f32 to vector<8x256xf32>
    %186 = arith.mulf %185, %5 : vector<8x256xf32>
    %187 = arith.addf %183, %186 : vector<8x256xf32>
    %cst_13 = arith.constant 0.000000e+00 : f32
    %188 = vector.broadcast %cst_13 : f32 to vector<8x256xf32>
    %189 = arith.maximumf %187, %188 : vector<8x256xf32>
    %c41 = arith.constant 41 : index
    %190 = memref.load %arg1[%c41] : memref<128xf32, #tpu.memory_space<smem>>
    %191 = vector.broadcast %190 : f32 to vector<8x256xf32>
    %192 = arith.mulf %191, %189 : vector<8x256xf32>
    %193 = arith.addf %161, %192 : vector<8x256xf32>
    %c50 = arith.constant 50 : index
    %194 = memref.load %arg1[%c50] : memref<128xf32, #tpu.memory_space<smem>>
    %195 = vector.broadcast %194 : f32 to vector<8x256xf32>
    %196 = arith.mulf %195, %189 : vector<8x256xf32>
    %197 = arith.addf %165, %196 : vector<8x256xf32>
    %c59 = arith.constant 59 : index
    %198 = memref.load %arg1[%c59] : memref<128xf32, #tpu.memory_space<smem>>
    %199 = vector.broadcast %198 : f32 to vector<8x256xf32>
    %200 = arith.mulf %199, %189 : vector<8x256xf32>
    %201 = arith.addf %169, %200 : vector<8x256xf32>
    %c68 = arith.constant 68 : index
    %202 = memref.load %arg1[%c68] : memref<128xf32, #tpu.memory_space<smem>>
    %203 = vector.broadcast %202 : f32 to vector<8x256xf32>
    %204 = arith.mulf %203, %189 : vector<8x256xf32>
    %205 = arith.addf %173, %204 : vector<8x256xf32>
    %c33 = arith.constant 33 : index
    %206 = memref.load %arg1[%c33] : memref<128xf32, #tpu.memory_space<smem>>
    %c18 = arith.constant 18 : index
    %207 = memref.load %arg1[%c18] : memref<128xf32, #tpu.memory_space<smem>>
    %208 = vector.broadcast %207 : f32 to vector<8x256xf32>
    %209 = arith.mulf %208, %1 : vector<8x256xf32>
    %210 = vector.broadcast %206 : f32 to vector<8x256xf32>
    %211 = arith.addf %210, %209 : vector<8x256xf32>
    %c19 = arith.constant 19 : index
    %212 = memref.load %arg1[%c19] : memref<128xf32, #tpu.memory_space<smem>>
    %213 = vector.broadcast %212 : f32 to vector<8x256xf32>
    %214 = arith.mulf %213, %3 : vector<8x256xf32>
    %215 = arith.addf %211, %214 : vector<8x256xf32>
    %c20 = arith.constant 20 : index
    %216 = memref.load %arg1[%c20] : memref<128xf32, #tpu.memory_space<smem>>
    %217 = vector.broadcast %216 : f32 to vector<8x256xf32>
    %218 = arith.mulf %217, %5 : vector<8x256xf32>
    %219 = arith.addf %215, %218 : vector<8x256xf32>
    %cst_14 = arith.constant 0.000000e+00 : f32
    %220 = vector.broadcast %cst_14 : f32 to vector<8x256xf32>
    %221 = arith.maximumf %219, %220 : vector<8x256xf32>
    %c42 = arith.constant 42 : index
    %222 = memref.load %arg1[%c42] : memref<128xf32, #tpu.memory_space<smem>>
    %223 = vector.broadcast %222 : f32 to vector<8x256xf32>
    %224 = arith.mulf %223, %221 : vector<8x256xf32>
    %225 = arith.addf %193, %224 : vector<8x256xf32>
    %c51 = arith.constant 51 : index
    %226 = memref.load %arg1[%c51] : memref<128xf32, #tpu.memory_space<smem>>
    %227 = vector.broadcast %226 : f32 to vector<8x256xf32>
    %228 = arith.mulf %227, %221 : vector<8x256xf32>
    %229 = arith.addf %197, %228 : vector<8x256xf32>
    %c60 = arith.constant 60 : index
    %230 = memref.load %arg1[%c60] : memref<128xf32, #tpu.memory_space<smem>>
    %231 = vector.broadcast %230 : f32 to vector<8x256xf32>
    %232 = arith.mulf %231, %221 : vector<8x256xf32>
    %233 = arith.addf %201, %232 : vector<8x256xf32>
    %c69 = arith.constant 69 : index
    %234 = memref.load %arg1[%c69] : memref<128xf32, #tpu.memory_space<smem>>
    %235 = vector.broadcast %234 : f32 to vector<8x256xf32>
    %236 = arith.mulf %235, %221 : vector<8x256xf32>
    %237 = arith.addf %205, %236 : vector<8x256xf32>
    %c34 = arith.constant 34 : index
    %238 = memref.load %arg1[%c34] : memref<128xf32, #tpu.memory_space<smem>>
    %c21 = arith.constant 21 : index
    %239 = memref.load %arg1[%c21] : memref<128xf32, #tpu.memory_space<smem>>
    %240 = vector.broadcast %239 : f32 to vector<8x256xf32>
    %241 = arith.mulf %240, %1 : vector<8x256xf32>
    %242 = vector.broadcast %238 : f32 to vector<8x256xf32>
    %243 = arith.addf %242, %241 : vector<8x256xf32>
    %c22 = arith.constant 22 : index
    %244 = memref.load %arg1[%c22] : memref<128xf32, #tpu.memory_space<smem>>
    %245 = vector.broadcast %244 : f32 to vector<8x256xf32>
    %246 = arith.mulf %245, %3 : vector<8x256xf32>
    %247 = arith.addf %243, %246 : vector<8x256xf32>
    %c23 = arith.constant 23 : index
    %248 = memref.load %arg1[%c23] : memref<128xf32, #tpu.memory_space<smem>>
    %249 = vector.broadcast %248 : f32 to vector<8x256xf32>
    %250 = arith.mulf %249, %5 : vector<8x256xf32>
    %251 = arith.addf %247, %250 : vector<8x256xf32>
    %cst_15 = arith.constant 0.000000e+00 : f32
    %252 = vector.broadcast %cst_15 : f32 to vector<8x256xf32>
    %253 = arith.maximumf %251, %252 : vector<8x256xf32>
    %c43 = arith.constant 43 : index
    %254 = memref.load %arg1[%c43] : memref<128xf32, #tpu.memory_space<smem>>
    %255 = vector.broadcast %254 : f32 to vector<8x256xf32>
    %256 = arith.mulf %255, %253 : vector<8x256xf32>
    %257 = arith.addf %225, %256 : vector<8x256xf32>
    %c52 = arith.constant 52 : index
    %258 = memref.load %arg1[%c52] : memref<128xf32, #tpu.memory_space<smem>>
    %259 = vector.broadcast %258 : f32 to vector<8x256xf32>
    %260 = arith.mulf %259, %253 : vector<8x256xf32>
    %261 = arith.addf %229, %260 : vector<8x256xf32>
    %c61 = arith.constant 61 : index
    %262 = memref.load %arg1[%c61] : memref<128xf32, #tpu.memory_space<smem>>
    %263 = vector.broadcast %262 : f32 to vector<8x256xf32>
    %264 = arith.mulf %263, %253 : vector<8x256xf32>
    %265 = arith.addf %233, %264 : vector<8x256xf32>
    %c70 = arith.constant 70 : index
    %266 = memref.load %arg1[%c70] : memref<128xf32, #tpu.memory_space<smem>>
    %267 = vector.broadcast %266 : f32 to vector<8x256xf32>
    %268 = arith.mulf %267, %253 : vector<8x256xf32>
    %269 = arith.addf %237, %268 : vector<8x256xf32>
    %c35 = arith.constant 35 : index
    %270 = memref.load %arg1[%c35] : memref<128xf32, #tpu.memory_space<smem>>
    %c24 = arith.constant 24 : index
    %271 = memref.load %arg1[%c24] : memref<128xf32, #tpu.memory_space<smem>>
    %272 = vector.broadcast %271 : f32 to vector<8x256xf32>
    %273 = arith.mulf %272, %1 : vector<8x256xf32>
    %274 = vector.broadcast %270 : f32 to vector<8x256xf32>
    %275 = arith.addf %274, %273 : vector<8x256xf32>
    %c25 = arith.constant 25 : index
    %276 = memref.load %arg1[%c25] : memref<128xf32, #tpu.memory_space<smem>>
    %277 = vector.broadcast %276 : f32 to vector<8x256xf32>
    %278 = arith.mulf %277, %3 : vector<8x256xf32>
    %279 = arith.addf %275, %278 : vector<8x256xf32>
    %c26 = arith.constant 26 : index
    %280 = memref.load %arg1[%c26] : memref<128xf32, #tpu.memory_space<smem>>
    %281 = vector.broadcast %280 : f32 to vector<8x256xf32>
    %282 = arith.mulf %281, %5 : vector<8x256xf32>
    %283 = arith.addf %279, %282 : vector<8x256xf32>
    %cst_16 = arith.constant 0.000000e+00 : f32
    %284 = vector.broadcast %cst_16 : f32 to vector<8x256xf32>
    %285 = arith.maximumf %283, %284 : vector<8x256xf32>
    %c44 = arith.constant 44 : index
    %286 = memref.load %arg1[%c44] : memref<128xf32, #tpu.memory_space<smem>>
    %287 = vector.broadcast %286 : f32 to vector<8x256xf32>
    %288 = arith.mulf %287, %285 : vector<8x256xf32>
    %289 = arith.addf %257, %288 : vector<8x256xf32>
    %c53 = arith.constant 53 : index
    %290 = memref.load %arg1[%c53] : memref<128xf32, #tpu.memory_space<smem>>
    %291 = vector.broadcast %290 : f32 to vector<8x256xf32>
    %292 = arith.mulf %291, %285 : vector<8x256xf32>
    %293 = arith.addf %261, %292 : vector<8x256xf32>
    %c62 = arith.constant 62 : index
    %294 = memref.load %arg1[%c62] : memref<128xf32, #tpu.memory_space<smem>>
    %295 = vector.broadcast %294 : f32 to vector<8x256xf32>
    %296 = arith.mulf %295, %285 : vector<8x256xf32>
    %297 = arith.addf %265, %296 : vector<8x256xf32>
    %c71 = arith.constant 71 : index
    %298 = memref.load %arg1[%c71] : memref<128xf32, #tpu.memory_space<smem>>
    %299 = vector.broadcast %298 : f32 to vector<8x256xf32>
    %300 = arith.mulf %299, %285 : vector<8x256xf32>
    %301 = arith.addf %269, %300 : vector<8x256xf32>
    %c0_17 = arith.constant 0 : index
    %c0_18 = arith.constant 0 : index
    %c0_19 = arith.constant 0 : index
    %302 = vector.load %arg3[%c0_17, %c0_18, %c0_19] : memref<4x8x256xf32, #tpu.memory_space<vmem>>, vector<1x8x256xf32>
    %303 = vector.shape_cast %302 : vector<1x8x256xf32> to vector<8x256xf32>
    %304 = vector.shape_cast %289 : vector<8x256xf32> to vector<1x8x256xf32>
    tpu.vector_store %arg3[%c0_17, %c0_18, %c0_19], %304 {strides = array<i32>} : memref<4x8x256xf32, #tpu.memory_space<vmem>>, vector<1x8x256xf32>,
    %c1_20 = arith.constant 1 : index
    %c0_21 = arith.constant 0 : index
    %c0_22 = arith.constant 0 : index
    %305 = vector.load %arg3[%c1_20, %c0_21, %c0_22] : memref<4x8x256xf32, #tpu.memory_space<vmem>>, vector<1x8x256xf32>
    %306 = vector.shape_cast %305 : vector<1x8x256xf32> to vector<8x256xf32>
    %307 = vector.shape_cast %293 : vector<8x256xf32> to vector<1x8x256xf32>
    tpu.vector_store %arg3[%c1_20, %c0_21, %c0_22], %307 {strides = array<i32>} : memref<4x8x256xf32, #tpu.memory_space<vmem>>, vector<1x8x256xf32>,
    %c2_23 = arith.constant 2 : index
    %c0_24 = arith.constant 0 : index
    %c0_25 = arith.constant 0 : index
    %308 = vector.load %arg3[%c2_23, %c0_24, %c0_25] : memref<4x8x256xf32, #tpu.memory_space<vmem>>, vector<1x8x256xf32>
    %309 = vector.shape_cast %308 : vector<1x8x256xf32> to vector<8x256xf32>
    %310 = vector.shape_cast %297 : vector<8x256xf32> to vector<1x8x256xf32>
    tpu.vector_store %arg3[%c2_23, %c0_24, %c0_25], %310 {strides = array<i32>} : memref<4x8x256xf32, #tpu.memory_space<vmem>>, vector<1x8x256xf32>,
    %c3_26 = arith.constant 3 : index
    %c0_27 = arith.constant 0 : index
    %c0_28 = arith.constant 0 : index
    %311 = vector.load %arg3[%c3_26, %c0_27, %c0_28] : memref<4x8x256xf32, #tpu.memory_space<vmem>>, vector<1x8x256xf32>
    %312 = vector.shape_cast %311 : vector<1x8x256xf32> to vector<8x256xf32>
    %313 = vector.shape_cast %301 : vector<8x256xf32> to vector<1x8x256xf32>
    tpu.vector_store %arg3[%c3_26, %c0_27, %c0_28], %313 {strides = array<i32>} : memref<4x8x256xf32, #tpu.memory_space<vmem>>, vector<1x8x256xf32>,
    return
  }
  func.func @transform_0(%arg0: i32) -> i32 {
    %c0_i32 = arith.constant 0 : i32
    %c0_i32_0 = arith.constant 0 : i32
    return %c0_i32 : i32
  }
  func.func @transform_1(%arg0: i32) -> (i32, i32, i32) {
    %c0_i32 = arith.constant 0 : i32
    %c0_i32_0 = arith.constant 0 : i32
    %c0_i32_1 = arith.constant 0 : i32
    return %c0_i32, %arg0, %c0_i32_0 : i32, i32, i32
  }
  func.func @transform_2(%arg0: i32) -> (i32, i32, i32) {
    %c0_i32 = arith.constant 0 : i32
    %c0_i32_0 = arith.constant 0 : i32
    %c0_i32_1 = arith.constant 0 : i32
    return %c0_i32, %arg0, %c0_i32_0 : i32, i32, i32
  }
}

</mosaic_0001>

<bundles_post_ra>
// kernel: fused_mlp.1
= control target key start
LH: loop header
LB: loop body
LE: loop exit
PB: predicated region body
PF: predicated region fallthrough
CT: control target
= control target key end

     0   :  { %7 = vsyncpa [#allocation3], 0  ;;  %s570_s12 = smov [#allocation2]   ;;  %s1070_s0 = inlined_call_operand.vmem [shape: f32[128], index: 0, kind: input, shape index: {}]   ;;  %s1071_s1 = inlined_call_operand.vmem [shape: f32[3,8,256], index: 1, kind: input, shape index: {}]   ;;  %s1072_s2 = inlined_call_operand.vmem [shape: f32[4,8,256], index: 2, kind: output, shape index: {}]  }
   0x1   :  { %s13_s11 = sshll.u32 %s1070_s0, 4  ;;  %s14_s11 = int_to_ptr.vmem [resolvable:$true] %s13_s11 }
   0x2   :  { %16 = dma.vmem_to_smem %s14_s11, 16, %s570_s12, [#allocation3]  }
   0x3   :  { %568 = dma.done.wait [#allocation3], 16  }
   0x4   :  { %569 = vsyncadd [#allocation3], 4294967280 }
   0x5   :  { %23 = sfence }
   0x6   :  { %s474_s13 = sld [smem:[#allocation2 + $0x1b]]  ;;  %v594_v0 = vld [vmem:[%s1071_s1] sm:$0xff]  ;;  %v601_v1 = vld [vmem:[%s1071_s1 + $0x8] sm:$0xff]  ;;  %v606_v2 = vld [vmem:[%s1071_s1 + $0x10] sm:$0xff] }
   0x7   :  { %s33_s14 = sld [smem:[#allocation2]]  ;;  %v613_v3 = vld [vmem:[%s1071_s1 + $0x18] sm:$0xff]  ;;  %v618_v4 = vld [vmem:[%s1071_s1 + $0x20] sm:$0xff]  ;;  %v626_v9 = vld [vmem:[%s1071_s1 + $0x28] sm:$0xff] }
   0x8   :  { %s475_s15 = sld [smem:[#allocation2 + $0x1]] }
   0x9   :  { %s476_s16 = sld [smem:[#allocation2 + $0x2]] }
   0xa   :  { %s589_s17 = sld [smem:[#allocation2 + $0x24]] }
   0xb   :  { %s596_s20 = sld [smem:[#allocation2 + $0x48]] }
   0xc   :  { %s608_s24 = sld [smem:[#allocation2 + $0x1c]]  ;;  %v37_v6 = vstv %s474_s13 }
   0xd   :  { %v34_v5 = vstv %s33_s14  ;;  %s620_s29 = sld [smem:[#allocation2 + $0x3]] }
   0xe   :  { %v35_v7 = vmul.f32 %v34_v5, %v594_v0  ;;  %v41_v8 = vstv %s475_s15  ;;  %s487_s30 = sld [smem:[#allocation2 + $0x4]]  ;;  %v36_v10 = vmul.f32 %v34_v5, %v601_v1 }
   0xf   :  { %v42_v11 = vmul.f32 %v606_v2, %v41_v8  ;;  %v47_v12 = vstv %s476_s16  ;;  %s630_s5 = sld [smem:[#allocation2 + $0x5]]  ;;  %v43_v13 = vmul.f32 %v613_v3, %v41_v8 }
  0x10   :  { %v38_v14 = vadd.f32 %v37_v6, %v35_v7  ;;  %v48_v15 = vmul.f32 %v618_v4, %v47_v12  ;;  %s634_s6 = sld [smem:[#allocation2 + $0x25]]  ;;  %v39_v16 = vadd.f32 %v37_v6, %v36_v10  ;;  %v49_v17 = vmul.f32 %v626_v9, %v47_v12 }
  0x11   :  { %s636_s1 = sld [smem:[#allocation2 + $0x1d]]  ;;  %v55_v20 = vstv %s589_s17  ;;  %v59_v32 = vstv %s596_s20 }
  0x12   :  { %v44_v18 = vadd.f32 %v42_v11, %v38_v14  ;;  %s639_s7 = sld [smem:[#allocation2 + $0x6]]  ;;  %v45_v19 = vadd.f32 %v43_v13, %v39_v16  ;;  %v91_v22 = vstv %s608_s24 }
  0x13   :  { %v88_v21 = vstv %s620_s29  ;;  %s644_s8 = sld [smem:[#allocation2 + $0x7]] }
  0x14   :  { %v50_v23 = vadd.f32 %v48_v15, %v44_v18  ;;  %v89_v24 = vmul.f32 %v88_v21, %v594_v0  ;;  %v95_v25 = vstv %s487_s30  ;;  %s647_s9 = sld [smem:[#allocation2 + $0x8]]  ;;  %v51_v26 = vadd.f32 %v49_v17, %v45_v19 }
  0x15   :  { %v96_v27 = vmul.f32 %v606_v2, %v95_v25  ;;  %v101_v28 = vstv %s630_s5  ;;  %s651_s10 = sld [smem:[#allocation2 + $0x26]]  ;;  %v90_v29 = vmul.f32 %v88_v21, %v601_v1  ;;  %v97_v30 = vmul.f32 %v613_v3, %v95_v25 }
  0x16   :  { %v655_v31 = vmax.f32 %v50_v23, 0.0  ;;  %v92_v33 = vadd.f32 %v91_v22, %v89_v24  ;;  %v102_v34 = vmul.f32 %v618_v4, %v101_v28  ;;  %s659_s11 = sld [smem:[#allocation2 + $0x1e]]  ;;  %v109_v35 = vstv %s634_s6 }
  0x17   :  { %v137_v36 = vstv %s636_s1  ;;  %s663_s12 = sld [smem:[#allocation2 + $0x9]]  ;;  %v665_v37 = vmax.f32 %v51_v26, 0.0  ;;  %v93_v38 = vadd.f32 %v91_v22, %v90_v29  ;;  %v103_v42 = vmul.f32 %v626_v9, %v101_v28 }
  0x18   :  { %v56_v39 = vmul.f32 %v55_v20, %v655_v31  ;;  %v98_v40 = vadd.f32 %v96_v27, %v92_v33  ;;  %v134_v41 = vstv %s639_s7  ;;  %s669_s13 = sld [smem:[#allocation2 + $0xa]] }
  0x19   :  { %v135_v43 = vmul.f32 %v134_v41, %v594_v0  ;;  %v141_v44 = vstv %s644_s8  ;;  %s674_s14 = sld [smem:[#allocation2 + $0xb]]  ;;  %v57_v45 = vmul.f32 %v55_v20, %v665_v37  ;;  %v99_v46 = vadd.f32 %v97_v30, %v93_v38 }
  0x1a   :  { %v60_v47 = vadd.f32 %v59_v32, %v56_v39  ;;  %v104_v48 = vadd.f32 %v102_v34, %v98_v40  ;;  %v142_v49 = vmul.f32 %v606_v2, %v141_v44  ;;  %v147_v50 = vstv %s647_s9  ;;  %s679_s15 = sld [smem:[#allocation2 + $0x27]] }
  0x1b   :  { %v138_v51 = vadd.f32 %v137_v36, %v135_v43  ;;  %v148_v52 = vmul.f32 %v618_v4, %v147_v50  ;;  %v155_v53 = vstv %s651_s10  ;;  %s683_s16 = sld [smem:[#allocation2 + $0x1f]]  ;;  %v61_v54 = vadd.f32 %v59_v32, %v57_v45 }
  0x1c   :  { %v685_v55 = vmax.f32 %v104_v48, 0.0  ;;  %v183_v56 = vstv %s659_s11  ;;  %s688_s17 = sld [smem:[#allocation2 + $0xc]]  ;;  %v105_v57 = vadd.f32 %v103_v42, %v99_v46  ;;  %v136_v58 = vmul.f32 %v134_v41, %v601_v1 }
  0x1d   :  { %v144_v59 = vadd.f32 %v142_v49, %v138_v51  ;;  %v180_v60 = vstv %s663_s12  ;;  %s692_s18 = sld [smem:[#allocation2 + $0xd]]  ;;  %v143_v61 = vmul.f32 %v613_v3, %v141_v44  ;;  %v149_v62 = vmul.f32 %v626_v9, %v147_v50 }
  0x1e   :  { %v110_v63 = vmul.f32 %v109_v35, %v685_v55  ;;  %v181_v5 = vmul.f32 %v180_v60, %v594_v0  ;;  %v187_v6 = vstv %s669_s13  ;;  %s699_s19 = sld [smem:[#allocation2 + $0xe]]  ;;  %v701_v7 = vmax.f32 %v105_v57, 0.0 }
  0x1f   :  { %v150_v8 = vadd.f32 %v148_v52, %v144_v59  ;;  %v188_v10 = vmul.f32 %v606_v2, %v187_v6  ;;  %v193_v11 = vstv %s674_s14  ;;  %s705_s20 = sld [smem:[#allocation2 + $0x28]]  ;;  %v139_v12 = vadd.f32 %v137_v36, %v136_v58 }
  0x20   :  { %v112_v13 = vadd.f32 %v110_v63, %v60_v47  ;;  %v184_v14 = vadd.f32 %v183_v56, %v181_v5  ;;  %v194_v15 = vmul.f32 %v618_v4, %v193_v11  ;;  %v201_v16 = vstv %s679_s15  ;;  %s709_s0 = sld [smem:[#allocation2 + $0x20]] }
  0x21   :  { %v711_v17 = vmax.f32 %v150_v8, 0.0  ;;  %v229_v18 = vstv %s683_s16  ;;  %s714_s21 = sld [smem:[#allocation2 + $0xf]]  ;;  %v111_v19 = vmul.f32 %v109_v35, %v701_v7  ;;  %v145_v20 = vadd.f32 %v143_v61, %v139_v12 }
  0x22   :  { %v190_v21 = vadd.f32 %v188_v10, %v184_v14  ;;  %v226_v22 = vstv %s688_s17  ;;  %s718_s22 = sld [smem:[#allocation2 + $0x10]]  ;;  %v182_v23 = vmul.f32 %v180_v60, %v601_v1  ;;  %v189_v24 = vmul.f32 %v613_v3, %v187_v6 }
  0x23   :  { %v156_v25 = vmul.f32 %v155_v53, %v711_v17  ;;  %v227_v26 = vmul.f32 %v226_v22, %v594_v0  ;;  %v233_v27 = vstv %s692_s18  ;;  %s727_s23 = sld [smem:[#allocation2 + $0x11]]  ;;  %v113_v28 = vadd.f32 %v111_v19, %v61_v54 }
  0x24   :  { %v196_v29 = vadd.f32 %v194_v15, %v190_v21  ;;  %v234_v30 = vmul.f32 %v606_v2, %v233_v27  ;;  %v239_v32 = vstv %s699_s19  ;;  %s731_s24 = sld [smem:[#allocation2 + $0x29]]  ;;  %v151_v33 = vadd.f32 %v149_v62, %v145_v20 }
  0x25   :  { %v158_v34 = vadd.f32 %v156_v25, %v112_v13  ;;  %v230_v35 = vadd.f32 %v229_v18, %v227_v26  ;;  %v240_v36 = vmul.f32 %v618_v4, %v239_v32  ;;  %v247_v38 = vstv %s705_s20  ;;  %s735_s25 = sld [smem:[#allocation2 + $0x21]] }
  0x26   :  { %v737_v39 = vmax.f32 %v196_v29, 0.0  ;;  %v275_v40 = vstv %s709_s0  ;;  %s740_s26 = sld [smem:[#allocation2 + $0x12]]  ;;  %v742_v41 = vmax.f32 %v151_v33, 0.0  ;;  %v185_v42 = vadd.f32 %v183_v56, %v182_v23 }
  0x27   :  { %v236_v43 = vadd.f32 %v234_v30, %v230_v35  ;;  %v272_v44 = vstv %s714_s21  ;;  %s745_s27 = sld [smem:[#allocation2 + $0x13]]  ;;  %v195_v45 = vmul.f32 %v626_v9, %v193_v11  ;;  %v228_v46 = vmul.f32 %v226_v22, %v601_v1 }
  0x28   :  { %v202_v47 = vmul.f32 %v201_v16, %v737_v39  ;;  %v273_v48 = vmul.f32 %v272_v44, %v594_v0  ;;  %v279_v49 = vstv %s718_s22  ;;  %s754_s28 = sld [smem:[#allocation2 + $0x14]]  ;;  %v157_v50 = vmul.f32 %v155_v53, %v742_v41 }
  0x29   :  { %v242_v51 = vadd.f32 %v240_v36, %v236_v43  ;;  %v280_v52 = vmul.f32 %v606_v2, %v279_v49  ;;  %v285_v54 = vstv %s727_s23  ;;  %s761_s29 = sld [smem:[#allocation2 + $0x2a]]  ;;  %v191_v56 = vadd.f32 %v189_v24, %v185_v42 }
  0x2a   :  { %v204_v57 = vadd.f32 %v202_v47, %v158_v34  ;;  %v276_v58 = vadd.f32 %v275_v40, %v273_v48  ;;  %v286_v59 = vmul.f32 %v618_v4, %v285_v54  ;;  %v293_v60 = vstv %s731_s24  ;;  %s769_s30 = sld [smem:[#allocation2 + $0x22]] }
  0x2b   :  { %v771_v53 = vmax.f32 %v242_v51, 0.0  ;;  %v321_v61 = vstv %s735_s25  ;;  %s774_s3 = sld [smem:[#allocation2 + $0x15]]  ;;  %v159_v62 = vadd.f32 %v157_v50, %v113_v28  ;;  %v197_v63 = vadd.f32 %v195_v45, %v191_v56 }
  0x2c   :  { %v282_v5 = vadd.f32 %v280_v52, %v276_v58  ;;  %v318_v6 = vstv %s740_s26  ;;  %s777_s4 = sld [smem:[#allocation2 + $0x16]]  ;;  %v231_v8 = vadd.f32 %v229_v18, %v228_v46  ;;  %v235_v10 = vmul.f32 %v613_v3, %v233_v27 }
  0x2d   :  { %v248_v11 = vmul.f32 %v247_v38, %v771_v53  ;;  %v319_v12 = vmul.f32 %v318_v6, %v594_v0  ;;  %v325_v13 = vstv %s745_s27  ;;  %s785_s5 = sld [smem:[#allocation2 + $0x17]]  ;;  %v787_v14 = vmax.f32 %v197_v63, 0.0 }
  0x2e   :  { %v288_v15 = vadd.f32 %v286_v59, %v282_v5  ;;  %v326_v19 = vmul.f32 %v606_v2, %v325_v13  ;;  %v331_v18 = vstv %s754_s28  ;;  %s793_s6 = sld [smem:[#allocation2 + $0x2b]]  ;;  %v237_v20 = vadd.f32 %v235_v10, %v231_v8 }
  0x2f   :  { %v250_v21 = vadd.f32 %v248_v11, %v204_v57  ;;  %v322_v22 = vadd.f32 %v321_v61, %v319_v12  ;;  %v332_v23 = vmul.f32 %v618_v4, %v331_v18  ;;  %v339_v24 = vstv %s761_s29  ;;  %s801_s1 = sld [smem:[#allocation2 + $0x23]] }
  0x30   :  { %v803_v25 = vmax.f32 %v288_v15, 0.0  ;;  %v367_v26 = vstv %s769_s30  ;;  %s806_s7 = sld [smem:[#allocation2 + $0x18]]  ;;  %v203_v27 = vmul.f32 %v201_v16, %v787_v14  ;;  %v241_v28 = vmul.f32 %v626_v9, %v239_v32 }
  0x31   :  { %v328_v29 = vadd.f32 %v326_v19, %v322_v22  ;;  %v364_v30 = vstv %s774_s3  ;;  %s813_s8 = sld [smem:[#allocation2 + $0x19]]  ;;  %v274_v33 = vmul.f32 %v272_v44, %v601_v1  ;;  %v281_v34 = vmul.f32 %v613_v3, %v279_v49 }
  0x32   :  { %v294_v35 = vmul.f32 %v293_v60, %v803_v25  ;;  %v365_v36 = vmul.f32 %v364_v30, %v594_v0  ;;  %v371_v16 = vstv %s777_s4  ;;  %s822_s9 = sld [smem:[#allocation2 + $0x1a]]  ;;  %v205_v32 = vadd.f32 %v203_v27, %v159_v62 }
  0x33   :  { %v334_v42 = vadd.f32 %v332_v23, %v328_v29  ;;  %v372_v43 = vmul.f32 %v606_v2, %v371_v16  ;;  %v377_v45 = vstv %s785_s5  ;;  %s826_s10 = sld [smem:[#allocation2 + $0x2c]]  ;;  %v243_v44 = vadd.f32 %v241_v28, %v237_v20 }
  0x34   :  { %v296_v46 = vadd.f32 %v294_v35, %v250_v21  ;;  %v368_v47 = vadd.f32 %v367_v26, %v365_v36  ;;  %v378_v48 = vmul.f32 %v618_v4, %v377_v45  ;;  %v385_v49 = vstv %s793_s6  ;;  %s844_s11 = sld [smem:[#allocation2 + $0x2d]] }
  0x35   :  { %v832_v50 = vmax.f32 %v334_v42, 0.0  ;;  %v413_v51 = vstv %s801_s1  ;;  %v835_v52 = vmax.f32 %v243_v44, 0.0  ;;  %v277_v56 = vadd.f32 %v275_v40, %v274_v33  ;;  %s854_s12 = sld [smem:[#allocation2 + $0x49]] }
  0x36   :  { %v374_v57 = vadd.f32 %v372_v43, %v368_v47  ;;  %v410_v58 = vstv %s806_s7  ;;  %v287_v59 = vmul.f32 %v626_v9, %v285_v54  ;;  %v320_v62 = vmul.f32 %v318_v6, %v601_v1  ;;  %s858_s13 = sld [smem:[#allocation2 + $0x2e]] }
  0x37   :  { %v340_v63 = vmul.f32 %v339_v24, %v832_v50  ;;  %v411_v5 = vmul.f32 %v410_v58, %v594_v0  ;;  %v417_v8 = vstv %s813_s8  ;;  %v249_v40 = vmul.f32 %v247_v38, %v835_v52  ;;  %s862_s14 = sld [smem:[#allocation2 + $0x2f]] }
  0x38   :  { %v380_v10 = vadd.f32 %v378_v48, %v374_v57  ;;  %v418_v54 = vmul.f32 %v606_v2, %v417_v8  ;;  %v423_v6 = vstv %s822_s9  ;;  %v283_v11 = vadd.f32 %v281_v34, %v277_v56  ;;  %s868_s15 = sld [smem:[#allocation2 + $0x30]] }
  0x39   :  { %v342_v12 = vadd.f32 %v340_v63, %v296_v46  ;;  %v414_v15 = vadd.f32 %v413_v51, %v411_v5  ;;  %v424_v0 = vmul.f32 %v618_v4, %v423_v6  ;;  %v431_v19 = vstv %s826_s10  ;;  %s884_s16 = sld [smem:[#allocation2 + $0x31]] }
  0x3a   :  { %v864_v38 = vmax.f32 %v380_v10, 0.0  ;;  %v251_v20 = vadd.f32 %v249_v40, %v205_v32  ;;  %v289_v21 = vadd.f32 %v287_v59, %v283_v11  ;;  %v323_v2 = vadd.f32 %v321_v61, %v320_v62  ;;  %s889_s17 = sld [smem:[#allocation2 + $0x32]] }
  0x3b   :  { %v420_v22 = vadd.f32 %v418_v54, %v414_v15  ;;  %v327_v23 = vmul.f32 %v613_v3, %v325_v13  ;;  %v333_v4 = vmul.f32 %v626_v9, %v331_v18  ;;  %v366_v27 = vmul.f32 %v364_v30, %v601_v1  ;;  %s896_s18 = sld [smem:[#allocation2 + $0x33]] }
  0x3c   :  { %v386_v28 = vmul.f32 %v385_v49, %v864_v38  ;;  %v880_v29 = vmax.f32 %v289_v21, 0.0  ;;  %v373_v33 = vmul.f32 %v613_v3, %v371_v16  ;;  %v379_v61 = vmul.f32 %v626_v9, %v377_v45  ;;  %s900_s19 = sld [smem:[#allocation2 + $0x34]] }
  0x3d   :  { %v426_v34 = vadd.f32 %v424_v0, %v420_v22  ;;  %v329_v35 = vadd.f32 %v327_v23, %v323_v2  ;;  %v369_v13 = vadd.f32 %v367_v26, %v366_v27  ;;  %v412_v18 = vmul.f32 %v410_v58, %v601_v1  ;;  %s905_s20 = sld [smem:[#allocation2 + $0x35]] }
  0x3e   :  { %v388_v30 = vadd.f32 %v386_v28, %v342_v12  ;;  %v295_v36 = vmul.f32 %v293_v60, %v880_v29  ;;  %v419_v16 = vmul.f32 %v613_v3, %v417_v8  ;;  %v425_v32 = vmul.f32 %v626_v9, %v423_v6  ;;  %s916_s0 = sld [smem:[#allocation2 + $0x36]] }
  0x3f   :  { %v898_v42 = vmax.f32 %v426_v34, 0.0  ;;  %v335_v26 = vadd.f32 %v333_v4, %v329_v35  ;;  %v375_v43 = vadd.f32 %v373_v33, %v369_v13  ;;  %v415_v1 = vadd.f32 %v413_v51, %v412_v18  ;;  %s923_s21 = sld [smem:[#allocation2 + $0x4a]] }
  0x40   :  { %v297_v45 = vadd.f32 %v295_v36, %v251_v20  ;;  %v63_v44 = vstv %s844_s11  ;;  %v67_v46 = vstv %s854_s12  ;;  %v115_v60 = vstv %s858_s13  ;;  %s927_s22 = sld [smem:[#allocation2 + $0x37]] }
  0x41   :  { %v432_v3 = vmul.f32 %v431_v19, %v898_v42  ;;  %v910_v9 = vmax.f32 %v335_v26, 0.0  ;;  %v381_v47 = vadd.f32 %v379_v61, %v375_v43  ;;  %v421_v48 = vadd.f32 %v419_v16, %v415_v1  ;;  %s937_s25 = sld [smem:[#allocation2 + $0x38]] }
  0x42   :  { %v64_v56 = vmul.f32 %v63_v44, %v655_v31  ;;  %v116_v51 = vmul.f32 %v115_v60, %v685_v55  ;;  %v161_v57 = vstv %s862_s14  ;;  %v207_v58 = vstv %s868_s15  ;;  %s941_s26 = sld [smem:[#allocation2 + $0x39]] }
  0x43   :  { %v434_v59 = vadd.f32 %v432_v3, %v388_v30  ;;  %v341_v62 = vmul.f32 %v339_v24, %v910_v9  ;;  %v921_v63 = vmax.f32 %v381_v47, 0.0  ;;  %v427_v5 = vadd.f32 %v425_v32, %v421_v48  ;;  %s948_s27 = sld [smem:[#allocation2 + $0x3a]] }
  0x44   :  { %v68_v8 = vadd.f32 %v67_v46, %v64_v56  ;;  %v162_v40 = vmul.f32 %v161_v57, %v711_v17  ;;  %v253_v10 = vstv %s884_s16  ;;  %v208_v12 = vmul.f32 %v207_v58, %v737_v39  ;;  %s953_s28 = sld [smem:[#allocation2 + $0x3b]] }
  0x45   :  { %454 = vst [vmem:[%s1072_s2] sm:$0xff] %v434_v59  ;;  %v343_v24 = vadd.f32 %v341_v62, %v297_v45  ;;  %v387_v54 = vmul.f32 %v385_v49, %v921_v63  ;;  %v935_v6 = vmax.f32 %v427_v5, 0.0  ;;  %v254_v15 = vmul.f32 %v253_v10, %v771_v53  ;;  %s956_s29 = sld [smem:[#allocation2 + $0x3c]] }
  0x46   :  { %v118_v11 = vadd.f32 %v116_v51, %v68_v8  ;;  %v299_v21 = vstv %s889_s17  ;;  %v345_v2 = vstv %s896_s18  ;;  %v391_v22 = vstv %s900_s19  ;;  %s960_s30 = sld [smem:[#allocation2 + $0x3d]] }
  0x47   :  { %v389_v0 = vadd.f32 %v387_v54, %v343_v24  ;;  %v433_v20 = vmul.f32 %v431_v19, %v935_v6  ;;  %v437_v23 = vstv %s905_s20  ;;  %v65_v4 = vmul.f32 %v63_v44, %v665_v37  ;;  %s969_s5 = sld [smem:[#allocation2 + $0x3e]] }
  0x48   :  { %v164_v49 = vadd.f32 %v162_v40, %v118_v11  ;;  %v117_v28 = vmul.f32 %v115_v60, %v701_v7  ;;  %v300_v19 = vmul.f32 %v299_v21, %v803_v25  ;;  %v163_v34 = vmul.f32 %v161_v57, %v742_v41  ;;  %s977_s6 = sld [smem:[#allocation2 + $0x3f]] }
  0x49   :  { %v435_v27 = vadd.f32 %v433_v20, %v389_v0  ;;  %v69_v61 = vadd.f32 %v67_v46, %v65_v4  ;;  %v346_v35 = vmul.f32 %v345_v2, %v832_v50  ;;  %v392_v13 = vmul.f32 %v391_v22, %v864_v38  ;;  %s981_s1 = sld [smem:[#allocation2 + $0x4b]] }
  0x4a   :  { %v210_v33 = vadd.f32 %v208_v12, %v164_v49  ;;  %v438_v18 = vmul.f32 %v437_v23, %v898_v42  ;;  %v209_v30 = vmul.f32 %v207_v58, %v787_v14  ;;  %v71_v32 = vstv %s916_s0  ;;  %s986_s7 = sld [smem:[#allocation2 + $0x40]] }
  0x4b   :  { %455 = vst [vmem:[%s1072_s2 + $0x8] sm:$0xff] %v435_v27  ;;  %v119_v16 = vadd.f32 %v117_v28, %v69_v61  ;;  %v75_v26 = vstv %s923_s21  ;;  %v255_v43 = vmul.f32 %v253_v10, %v835_v52  ;;  %v72_v1 = vmul.f32 %v71_v32, %v655_v31  ;;  %s990_s8 = sld [smem:[#allocation2 + $0x41]] }
  0x4c   :  { %v256_v36 = vadd.f32 %v254_v15, %v210_v33  ;;  %v121_v45 = vstv %s927_s22  ;;  %v167_v44 = vstv %s937_s25  ;;  %v213_v47 = vstv %s941_s26  ;;  %s997_s9 = sld [smem:[#allocation2 + $0x42]] }
  0x4d   :  { %v165_v60 = vadd.f32 %v163_v34, %v119_v16  ;;  %v122_v3 = vmul.f32 %v121_v45, %v685_v55  ;;  %v301_v48 = vmul.f32 %v299_v21, %v880_v29  ;;  %v76_v56 = vadd.f32 %v75_v26, %v72_v1  ;;  %s1002_s10 = sld [smem:[#allocation2 + $0x43]] }
  0x4e   :  { %v302_v46 = vadd.f32 %v300_v19, %v256_v36  ;;  %v168_v51 = vmul.f32 %v167_v44, %v711_v17  ;;  %v259_v57 = vstv %s948_s27  ;;  %v347_v62 = vmul.f32 %v345_v2, %v910_v9  ;;  %s1008_s11 = sld [smem:[#allocation2 + $0x44]] }
  0x4f   :  { %v211_v59 = vadd.f32 %v209_v30, %v165_v60  ;;  %v393_v5 = vmul.f32 %v391_v22, %v921_v63  ;;  %v124_v8 = vadd.f32 %v122_v3, %v76_v56  ;;  %v214_v40 = vmul.f32 %v213_v47, %v737_v39  ;;  %s1018_s14 = sld [smem:[#allocation2 + $0x45]] }
  0x50   :  { %v348_v58 = vadd.f32 %v346_v35, %v302_v46  ;;  %v260_v10 = vmul.f32 %v259_v57, %v771_v53  ;;  %v305_v24 = vstv %s953_s28  ;;  %v351_v12 = vstv %s956_s29  ;;  %s1025_s15 = sld [smem:[#allocation2 + $0x46]] }
  0x51   :  { %v257_v11 = vadd.f32 %v255_v43, %v211_v59  ;;  %v397_v15 = vstv %s960_s30  ;;  %v170_v0 = vadd.f32 %v168_v51, %v124_v8  ;;  %v443_v20 = vstv %s969_s5  ;;  %s1031_s16 = sld [smem:[#allocation2 + $0x47]] }
  0x52   :  { %v394_v54 = vadd.f32 %v392_v13, %v348_v58  ;;  %v73_v21 = vmul.f32 %v71_v32, %v665_v37  ;;  %v123_v2 = vmul.f32 %v121_v45, %v701_v7  ;;  %v439_v4 = vmul.f32 %v437_v23, %v935_v6 }
  0x53   :  { %v303_v22 = vadd.f32 %v301_v48, %v257_v11  ;;  %v306_v27 = vmul.f32 %v305_v24, %v803_v25  ;;  %v216_v28 = vadd.f32 %v214_v40, %v170_v0  ;;  %v352_v33 = vmul.f32 %v351_v12, %v832_v50 }
  0x54   :  { %v440_v49 = vadd.f32 %v438_v18, %v394_v54  ;;  %v77_v19 = vadd.f32 %v75_v26, %v73_v21  ;;  %v169_v61 = vmul.f32 %v167_v44, %v742_v41  ;;  %v398_v35 = vmul.f32 %v397_v15, %v864_v38 }
  0x55   :  { %v349_v34 = vadd.f32 %v347_v62, %v303_v22  ;;  %v444_v23 = vmul.f32 %v443_v20, %v898_v42  ;;  %v215_v13 = vmul.f32 %v213_v47, %v787_v14  ;;  %v262_v18 = vadd.f32 %v260_v10, %v216_v28 }
  0x56   :  { %549 = vst [vmem:[%s1072_s2 + $0x10] sm:$0xff] %v440_v49  ;;  %v125_v30 = vadd.f32 %v123_v2, %v77_v19  ;;  %v79_v36 = vstv %s977_s6  ;;  %v83_v16 = vstv %s981_s1  ;;  %v127_v43 = vstv %s986_s7 }
  0x57   :  { %v395_v32 = vadd.f32 %v393_v5, %v349_v34  ;;  %v80_v26 = vmul.f32 %v79_v36, %v655_v31  ;;  %v173_v1 = vstv %s990_s8  ;;  %v308_v45 = vadd.f32 %v306_v27, %v262_v18 }
  0x58   :  { %v171_v44 = vadd.f32 %v169_v61, %v125_v30  ;;  %v261_v46 = vmul.f32 %v259_v57, %v835_v52  ;;  %v128_v60 = vmul.f32 %v127_v43, %v685_v55  ;;  %v174_v48 = vmul.f32 %v173_v1, %v711_v17 }
  0x59   :  { %v441_v3 = vadd.f32 %v439_v4, %v395_v32  ;;  %v84_v47 = vadd.f32 %v83_v16, %v80_v26  ;;  %v219_v56 = vstv %s997_s9  ;;  %v354_v51 = vadd.f32 %v352_v33, %v308_v45 }
  0x5a   :  { %v217_v58 = vadd.f32 %v215_v13, %v171_v44  ;;  %v307_v31 = vmul.f32 %v305_v24, %v880_v29  ;;  %v265_v59 = vstv %s1002_s10  ;;  %v220_v57 = vmul.f32 %v219_v56, %v737_v39 }
  0x5b   :  { %550 = vst [vmem:[%s1072_s2 + $0x18] sm:$0xff] %v441_v3  ;;  %v130_v55 = vadd.f32 %v128_v60, %v84_v47  ;;  %v400_v62 = vadd.f32 %v398_v35, %v354_v51  ;;  %v353_v17 = vmul.f32 %v351_v12, %v910_v9  ;;  %v311_v8 = vstv %s1008_s11 }
  0x5c   :  { %v263_v5 = vadd.f32 %v261_v46, %v217_v58  ;;  %v399_v40 = vmul.f32 %v397_v15, %v921_v63  ;;  %v266_v24 = vmul.f32 %v265_v59, %v771_v53  ;;  %v81_v54 = vmul.f32 %v79_v36, %v665_v37 }
  0x5d   :  { %v176_v10 = vadd.f32 %v174_v48, %v130_v55  ;;  %v446_v11 = vadd.f32 %v444_v23, %v400_v62  ;;  %v357_v21 = vstv %s1018_s14  ;;  %v129_v2 = vmul.f32 %v127_v43, %v701_v7 }
  0x5e   :  { %v309_v0 = vadd.f32 %v307_v31, %v263_v5  ;;  %v312_v49 = vmul.f32 %v311_v8, %v803_v25  ;;  %v85_v22 = vadd.f32 %v83_v16, %v81_v54  ;;  %v175_v12 = vmul.f32 %v173_v1, %v742_v41 }
  0x5f   :  { %v222_v39 = vadd.f32 %v220_v57, %v176_v10  ;;  %551 = vst [vmem:[%s1072_s2 + $0x20] sm:$0xff] %v446_v11  ;;  %v445_v53 = vmul.f32 %v443_v20, %v935_v6  ;;  %v403_v37 = vstv %s1025_s15  ;;  %v358_v27 = vmul.f32 %v357_v21, %v832_v50 }
  0x60   :  { %v355_v15 = vadd.f32 %v353_v17, %v309_v0  ;;  %v131_v28 = vadd.f32 %v129_v2, %v85_v22  ;;  %v221_v7 = vmul.f32 %v219_v56, %v787_v14  ;;  %v449_v19 = vstv %s1031_s16 }
  0x61   :  { %v268_v4 = vadd.f32 %v266_v24, %v222_v39  ;;  %v404_v61 = vmul.f32 %v403_v37, %v864_v38  ;;  %v267_v34 = vmul.f32 %v265_v59, %v835_v52  ;;  %v450_v13 = vmul.f32 %v449_v19, %v898_v42 }
  0x62   :  { %v401_v33 = vadd.f32 %v399_v40, %v355_v15  ;;  %v177_v41 = vadd.f32 %v175_v12, %v131_v28  ;;  %v313_v18 = vmul.f32 %v311_v8, %v880_v29  ;;  %v359_v30 = vmul.f32 %v357_v21, %v910_v9 }
  0x63   :  { %v314_v25 = vadd.f32 %v312_v49, %v268_v4  ;;  %v405_v16 = vmul.f32 %v403_v37, %v921_v63  ;;  %v451_v42 = vmul.f32 %v449_v19, %v935_v6 }
  0x64   :  { %v447_v35 = vadd.f32 %v445_v53, %v401_v33  ;;  %v223_v20 = vadd.f32 %v221_v7, %v177_v41 }
  0x65   :  { %v360_v23 = vadd.f32 %v358_v27, %v314_v25 }
  0x66   :  { %552 = vst [vmem:[%s1072_s2 + $0x28] sm:$0xff] %v447_v35  ;;  %v269_v50 = vadd.f32 %v267_v34, %v223_v20 }
  0x67   :  { %v406_v14 = vadd.f32 %v404_v61, %v360_v23 }
  0x68   :  { %v315_v38 = vadd.f32 %v313_v18, %v269_v50 }
  0x69   :  { %v452_v36 = vadd.f32 %v450_v13, %v406_v14 }
  0x6a   :  { %v361_v52 = vadd.f32 %v359_v30, %v315_v38 }
  0x6b   :  { %553 = vst [vmem:[%s1072_s2 + $0x30] sm:$0xff] %v452_v36 }
  0x6c   :  { %v407_v29 = vadd.f32 %v405_v16, %v361_v52 }
  0x6e   :  { %v453_v32 = vadd.f32 %v451_v42, %v407_v29 }
  0x70   :  { %554 = vst [vmem:[%s1072_s2 + $0x38] sm:$0xff] %v453_v32 }
  0x71   :  { %469 = vsyncpa [#allocation3], 1 }

</bundles_post_ra>
